<compile_context>
chip_gen: v7x
topology: tpu7x:2x2x1
jax: 0.10.0
libtpu: 0.0.40
codegen_flags: <defaults>
</compile_context>

<pallas_src>
import jax
import jax.numpy as jnp
from jax.experimental import pallas as pl
from jax.experimental.pallas import tpu as pltpu


_LANE = 128


def var_kernel(xt_ref, wt_ref, b_ref, o_ref):
    # xt_ref: (K, TM) VMEM tile -- K features on sublanes, TM rows on lanes
    # wt_ref: (K, 1)  VMEM      -- weight column for this output channel
    # b_ref : (D,)    SMEM      -- bias vector (scalar read, no VMEM tile wasted)
    # o_ref : (1, TM) VMEM      -- lane-dense output block (unmasked vst)
    d = pl.program_id(1)
    prod = xt_ref[...] * wt_ref[...]                                  # VPU, (K,1) bcast over lanes
    o_ref[...] = jnp.sum(prod, axis=0, keepdims=True) + b_ref[d]      # XLU sublane reduce + bias


def _choose_tile_m(m, k, itemsize):
    """Lane-aligned M tile: big enough to amortize the ~0.35us per-grid-step
    overhead, small enough that the double-buffered x tile stays well inside
    scoped VMEM on every generation (v7x has only 64 MiB physical per TC), and
    -- when M allows -- leaving >= 2 grid steps so the parallel axis can still
    be split across v7x's two TensorCores."""
    m_lanes = -(-m // _LANE) * _LANE
    if m_lanes <= _LANE:
        return _LANE
    budget = 24 * 1024 * 1024                                   # bytes for 2x-buffered x tile
    tm_cap = max(_LANE, (budget // (2 * k * itemsize)) // _LANE * _LANE)
    half = max(_LANE, (m_lanes // 2) // _LANE * _LANE)          # keep grid >= 2 when possible
    return min(tm_cap, half)


def var_forward(x, weights, bias):
    """x: (B, N, S, D); weights: (D, D*S); bias: (D,). Returns (B, N, D)."""
    B, N, S, D = x.shape
    M = B * N
    K = D * S
    assert weights.shape == (D, K) and bias.shape == (D,)

    # Feature-major layout: xt[j, m] == x.permute(0,1,3,2).reshape(M, K)[m, j]
    xt = jnp.transpose(x, (3, 2, 0, 1)).reshape(K, M)
    wt = weights.T.reshape(K, D)

    itemsize = jnp.dtype(x.dtype).itemsize
    TM = _choose_tile_m(M, K, itemsize)
    Mp = -(-M // TM) * TM
    if Mp != M:
        xt = jnp.pad(xt, ((0, 0), (0, Mp - M)))                 # zero lanes -> bias only, sliced off
    nm = Mp // TM

    out = pl.pallas_call(
        var_kernel,
        out_shape=jax.ShapeDtypeStruct((D, Mp), x.dtype),
        grid_spec=pltpu.PrefetchScalarGridSpec(
            num_scalar_prefetch=0,
            grid=(nm, D),
            in_specs=[
                pl.BlockSpec((K, TM), lambda i, d: (0, i)),              # x tile, M lane-dense
                pl.BlockSpec((K, 1), lambda i, d: (0, d)),               # weight column
                pl.BlockSpec(memory_space=pltpu.MemorySpace.SMEM),       # bias stays in SMEM
            ],
            out_specs=pl.BlockSpec((1, TM), lambda i, d: (d, i)),        # lane-dense output
        ),
        compiler_params=pltpu.CompilerParams(
            dimension_semantics=("parallel", "parallel"),
            vmem_limit_bytes=32 * 1024 * 1024,    # explicit; leaves headroom on v7x's 64 MiB
        ),
    )(xt, wt, bias)

    out = out[:, :M]                              # drop lane padding
    return jnp.transpose(out).reshape(B, N, D)


if __name__ == "__main__":
    # Small shapes consistent with the module: input_dim = 1 (fixed in __init__)
    seq_len = 8
    pred_len = 4          # unused by forward, kept for parity with the module
    input_dim = 1
    batch, num_station = 2, 8

    key = jax.random.PRNGKey(0)
    kx, kw, kb = jax.random.split(key, 3)

    x = jax.random.normal(kx, (batch, num_station, seq_len, input_dim), jnp.float32)
    weights = jax.random.normal(kw, (input_dim, input_dim * seq_len), jnp.float32)
    bias = jax.random.normal(kb, (input_dim,), jnp.float32)

    out = var_forward(x, weights, bias)
    out = jax.block_until_ready(out)

    # reference check in plain JAX (same math as the PyTorch forward)
    xp = jnp.transpose(x, (0, 1, 3, 2)).reshape(batch * num_station, input_dim * seq_len)
    ref = (xp @ weights.T + bias).reshape(batch, num_station, input_dim)
    assert out.shape == (batch, num_station, input_dim)
    assert jnp.allclose(out, ref, atol=1e-5, rtol=1e-5)

    print("KERNEL_OK")
</pallas_src>

<mosaic_0001>
module attributes {stable_mosaic.version = 11 : i64} {
  func.func @var_kernel(%arg0: i32, %arg1: i32, %arg2: memref<8x128xf32, #tpu.memory_space<vmem>>, %arg3: memref<8x1xf32, #tpu.memory_space<vmem>>, %arg4: memref<1xf32, #tpu.memory_space<smem>>, %arg5: memref<1x128xf32, #tpu.memory_space<vmem>>) attributes {dimension_semantics = [#tpu.dimension_semantics<parallel>, #tpu.dimension_semantics<parallel>], iteration_bounds = array<i64: 1, 1>, scalar_prefetch = 0 : i64, scratch_operands = 0 : i64, tpu.core_type = #tpu.core_type<tc>, window_params = [{transform_indices = @transform_0, window_bounds = array<i64: 8, 128>}, {transform_indices = @transform_1, window_bounds = array<i64: 8, 1>}, {transform_indices = @transform_2, window_bounds = array<i64: 1>}, {transform_indices = @transform_3, window_bounds = array<i64: 1, 128>}]} {
    %c0 = arith.constant 0 : index
    %c0_0 = arith.constant 0 : index
    %0 = vector.load %arg2[%c0, %c0_0] : memref<8x128xf32, #tpu.memory_space<vmem>>, vector<8x128xf32>
    %c0_1 = arith.constant 0 : index
    %c0_2 = arith.constant 0 : index
    %1 = vector.load %arg3[%c0_1, %c0_2] : memref<8x1xf32, #tpu.memory_space<vmem>>, vector<8x1xf32>
    %2 = vector.broadcast %1 : vector<8x1xf32> to vector<8x128xf32>
    %3 = arith.mulf %0, %2 : vector<8x128xf32>
    %cst = arith.constant dense<0.000000e+00> : vector<128xf32>
    %4 = vector.multi_reduction <add>, %3, %cst [0] : vector<8x128xf32> to vector<128xf32>
    %5 = vector.shape_cast %4 : vector<128xf32> to vector<1x128xf32>
    %6 = arith.index_cast %arg1 : i32 to index
    %7 = memref.load %arg4[%6] : memref<1xf32, #tpu.memory_space<smem>>
    %8 = vector.broadcast %7 : f32 to vector<1x128xf32>
    %9 = arith.addf %5, %8 : vector<1x128xf32>
    %c0_3 = arith.constant 0 : index
    %c0_4 = arith.constant 0 : index
    %10 = vector.load %arg5[%c0_3, %c0_4] : memref<1x128xf32, #tpu.memory_space<vmem>>, vector<1x128xf32>
    tpu.vector_store %arg5[%c0_3, %c0_4], %9 {strides = array<i32>} : memref<1x128xf32, #tpu.memory_space<vmem>>, vector<1x128xf32>,
    return
  }
  func.func @transform_0(%arg0: i32, %arg1: i32) -> (i32, i32) {
    %c0_i32 = arith.constant 0 : i32
    %c0_i32_0 = arith.constant 0 : i32
    return %c0_i32, %arg0 : i32, i32
  }
  func.func @transform_1(%arg0: i32, %arg1: i32) -> (i32, i32) {
    %c0_i32 = arith.constant 0 : i32
    %c0_i32_0 = arith.constant 0 : i32
    return %c0_i32, %arg1 : i32, i32
  }
  func.func @transform_2(%arg0: i32, %arg1: i32) -> i32 {
    %c0_i32 = arith.constant 0 : i32
    %c0_i32_0 = arith.constant 0 : i32
    return %c0_i32 : i32
  }
  func.func @transform_3(%arg0: i32, %arg1: i32) -> (i32, i32) {
    %c0_i32 = arith.constant 0 : i32
    return %arg1, %arg0 : i32, i32
  }
}

</mosaic_0001>

<bundles_post_ra>
// kernel: tpu_custom_call.1
= control target key start
LH: loop header
LB: loop body
LE: loop exit
PB: predicated region body
PF: predicated region fallthrough
CT: control target
= control target key end

     0   :  { %s118_s0 = inlined_call_operand.vmem [shape: f32[8,128], index: 0, kind: input, shape index: {}]   ;;  %s119_s1 = inlined_call_operand.vmem [shape: f32[8,1], index: 1, kind: input, shape index: {}]   ;;  %s120_s2 = inlined_call_operand.<no memory space> [shape: f32[1], index: 2, kind: input, shape index: {}]   ;;  %s121_s3 = inlined_call_operand.hbm [shape: f32[1,128], index: 3, kind: output, shape index: {}]  }
   0x1   :  { %v17_v0 = vld [vmem:[%s119_s1] sm:$0xff] }
   0x2   :  { %9 = vsyncpa [#allocation4], 0  ;;  %v75_v1 = vmov 0   ;;  %v16_v2 = vld [vmem:[%s118_s0] sm:$0xff]  ;;  %v31_v10 = vstv %s120_s2  ;;  %s76_s1 = smov [#allocation3]  }
   0x3   :  { %50 = vset.pattern.permute.xlu0 %v75_v1  ;;  %s40_s18 = sshll.u32 %s76_s1, 4  ;;  %s41_s18 = int_to_ptr.vmem [resolvable:$true] %s40_s18 }
   0x4   :  { %20 = vperm.xlu0 %50, %v17_v0   ;;  %s51_s19 = scalar_lea.vmem %s41_s18, 16  ;;  %s55_s0 = scalar_lea.vmem %s41_s18, 32 }
   0x5   :  { %p52_p0 = scmp.ne.s32.totalorder %s41_s18, %s51_s19  ;;  %p56_p1 = scmp.lt.s32.totalorder %s41_s18, %s41_s18 }
   0x6   :  { %p57_p2 = scmp.lt.s32.totalorder %s55_s0, %s51_s19 }
   0x8   :  { %p58_p3 = por %p57_p2, %p56_p1 }
   0xa   :  { %p59_p4 = pnand %p58_p3, %p52_p0 }
  0x83   :  { %v21_v3 = vpop.permute.xlu0 %20 }
  0x84   :  { %v23_v4 = vmul.f32 %v21_v3, %v16_v2 }
  0x86   :  { %v24_v5 = vrot.slane %v23_v4, 4 }
  0x88   :  { %v25_v6 = vadd.f32 %v24_v5, %v23_v4 }
  0x8a   :  { %v26_v7 = vrot.slane %v25_v6, 2 }
  0x8c   :  { %v27_v8 = vadd.f32 %v26_v7, %v25_v6 }
  0x8e   :  { %v28_v9 = vrot.slane %v27_v8, 1 }
  0x90   :  { %v29_v11 = vadd.f32 %v28_v9, %v27_v8 }
  0x92   :  { %v32_v12 = vadd.f32 %v31_v10, %v29_v11 }
  0x94   :  { %33 = vst [vmem:[#allocation3] sm:$0x1] %v32_v12 }
  0x95   :  { %62 = shalt.err (!%p59_p4)
}
  0x96   :  { %s63_s22 = scalar_lea.hbm %s121_s3, 16 }
  0x97   :  { %p64_p5 = scmp.ne.s32.totalorder %s121_s3, %s63_s22  ;;  %p67_p6 = scmp.lt.u32.totalorder %s63_s22, %s121_s3 }
  0x99   :  { %p69_p7 = pnand %p67_p6, %p64_p5 }
  0x9b   :  { %72 = shalt.err (!%p69_p7)
}
  0x9c   :  { %43 = dma.vmem_to_hbm [thread:$0]  %s41_s18, 16, %s121_s3, [#allocation4]  }
  0x9d   :  { %73 = dma.done.wait [#allocation4], 16  }
  0x9e   :  { %74 = vsyncadd [#allocation4], 4294967280 }
  0x9f   :  { %47 = vsyncpa [#allocation4], 1 }

</bundles_post_ra>
